<compile_context>
chip_gen: v5e
topology: v5e:2x2
jax: 0.10.0
libtpu: 0.0.40
codegen_flags: <defaults>
</compile_context>

<pallas_src>
import functools

import jax
import jax.numpy as jnp
from jax.experimental import pallas as pl
from jax.experimental.pallas import tpu as pltpu

HIDDEN = 512  # fixed by the module: nn.Linear(latent_dim, 512)


def decoder_mlp512_kernel(z_ref, w1_ref, b1_ref, w2_ref, b2_ref, out_ref):
    # ---- linear1 + ReLU ----
    h = jnp.dot(z_ref[...], w1_ref[...], preferred_element_type=jnp.float32) + b1_ref[...]
    h = jnp.maximum(h, 0.0).astype(w2_ref.dtype)            # ReLU (f32 VPU), bf16 for MXU

    # ---- linear2 + sigmoid ----
    logits = jnp.dot(h, w2_ref[...], preferred_element_type=jnp.float32) + b2_ref[...]

    # Numerically stable, exact sigmoid (kernel is HBM-bound -> EUP slack is free):
    #   x >= 0:  1 / (1 + exp(-x))      x < 0:  exp(x) / (1 + exp(x))
    pos = logits >= 0.0
    e = jnp.exp(jnp.where(pos, -logits, logits))             # exp of a non-positive arg
    inv = 1.0 / (1.0 + e)
    out_ref[...] = jnp.where(pos, inv, e * inv).astype(out_ref.dtype)


def _round_up(n, m):
    return ((n + m - 1) // m) * m


def _choose_tm(b, latent_dim, output_dim):
    """Pick the batch tile: large (amortize ~0.35us/step), >=2 tiles for big B, VMEM-safe."""
    # Per-row VMEM bytes: double-buffered bf16 input + double-buffered f32 output
    # + f32 hidden working set.
    per_row = 2 * 2 * latent_dim + 2 * 4 * output_dim + 4 * HIDDEN
    weight_bytes = 2 * (latent_dim * HIDDEN + HIDDEN * output_dim) + 4 * (HIDDEN + output_dim)
    budget = 32 * 1024 * 1024 - weight_bytes
    tm_vmem = max(16, (budget // per_row) // 16 * 16)

    if b <= 256:
        tm = _round_up(max(b, 1), 16)                 # single tile, bf16-packed rows
    else:
        # At least two tiles so both v7x TensorCores get work; cap tile at 1024 rows.
        tm = min(1024, _round_up(pl.cdiv(b, 2), 16))
    return min(tm, tm_vmem)


def prepare_kernel_params(params):
    """One-time conversion of f32 PyTorch-layout params to kernel layouts."""
    w1, b1, w2, b2 = params
    return (
        w1.astype(jnp.bfloat16),                       # (latent_dim, 512)
        b1.reshape(1, HIDDEN).astype(jnp.float32),     # (1, 512)
        w2.astype(jnp.bfloat16),                       # (512, output_dim)
        b2.reshape(1, -1).astype(jnp.float32),         # (1, output_dim)
    )


@functools.partial(jax.jit, static_argnames=("output_dim",))
def decoder_mlp512_forward(z, kernel_params, *, output_dim):
    """Replicates Decoder_MLP512.forward. z: (B, latent_dim) -> (B, 1, output_dim)."""
    w1, b1, w2, b2 = kernel_params
    b, latent_dim = z.shape

    tm = _choose_tm(b, latent_dim, output_dim)
    b_pad = _round_up(b, tm)

    z_in = z.astype(jnp.bfloat16)
    if b_pad != b:  # only pad batch rows when the tile doesn't divide B
        z_in = jnp.zeros((b_pad, latent_dim), jnp.bfloat16).at[:b].set(z_in)

    grid = (b_pad // tm,)
    out = pl.pallas_call(
        decoder_mlp512_kernel,
        grid=grid,
        in_specs=[
            pl.BlockSpec((tm, latent_dim), lambda i: (i, 0)),      # activations: batch-tiled
            pl.BlockSpec((latent_dim, HIDDEN), lambda i: (0, 0)),  # weights: VMEM-resident
            pl.BlockSpec((1, HIDDEN), lambda i: (0, 0)),
            pl.BlockSpec((HIDDEN, output_dim), lambda i: (0, 0)),
            pl.BlockSpec((1, output_dim), lambda i: (0, 0)),
        ],
        out_specs=pl.BlockSpec((tm, output_dim), lambda i: (i, 0)),
        out_shape=jax.ShapeDtypeStruct((b_pad, output_dim), jnp.float32),
        compiler_params=pltpu.CompilerParams(
            dimension_semantics=("parallel",),   # megacore shard over batch tiles
            vmem_limit_bytes=48 * 1024 * 1024,   # headroom under v7x's 64 MiB VMEM
        ),
    )(z_in, w1, b1, w2, b2)

    if b_pad != b:
        out = out[:b]
    # Final reshape(-1, 1, output_dim) is metadata-only.
    return out.reshape(-1, 1, output_dim)


def init_params(key, latent_dim, output_dim):
    """nn.Linear-style init; weights stored transposed as (in_features, out_features), f32."""
    layer_dims = [(latent_dim, HIDDEN), (HIDDEN, output_dim)]
    params = []
    for fan_in, fan_out in layer_dims:
        key, kw, kb = jax.random.split(key, 3)
        bound = 1.0 / jnp.sqrt(jnp.float32(fan_in))
        w = jax.random.uniform(kw, (fan_in, fan_out), jnp.float32, minval=-bound, maxval=bound)
        bb = jax.random.uniform(kb, (fan_out,), jnp.float32, minval=-bound, maxval=bound)
        params.extend([w, bb])
    return tuple(params)


def _reference_forward(z, params, output_dim):
    """Pure-JAX f32 reference of Decoder_MLP512.forward."""
    w1, b1, w2, b2 = params
    h = jnp.maximum(z @ w1 + b1, 0.0)
    y = jax.nn.sigmoid(h @ w2 + b2)
    return y.reshape(-1, 1, output_dim)


if __name__ == "__main__":
    # Small shapes consistent with the module (hidden width is fixed at 512).
    B, LATENT_DIM, OUTPUT_DIM = 16, 64, 32

    key = jax.random.PRNGKey(0)
    key, kz = jax.random.split(key)
    z = jax.random.normal(kz, (B, LATENT_DIM), jnp.float32)

    params = init_params(key, LATENT_DIM, OUTPUT_DIM)
    kparams = prepare_kernel_params(params)

    out = decoder_mlp512_forward(z, kparams, output_dim=OUTPUT_DIM)
    jax.block_until_ready(out)

    # Correctness checks vs. f32 reference (bf16 matmul operands -> loose tolerance).
    ref = _reference_forward(z, params, OUTPUT_DIM)
    assert out.shape == (B, 1, OUTPUT_DIM)
    assert bool(jnp.all(out >= 0.0)) and bool(jnp.all(out <= 1.0))
    assert bool(jnp.allclose(out, ref, atol=2e-2, rtol=2e-2))

    print("KERNEL_OK")
</pallas_src>

<mosaic_0001>
module attributes {stable_mosaic.version = 11 : i64} {
  func.func @decoder_mlp512_kernel(%arg0: i32, %arg1: memref<16x64xbf16, #tpu.memory_space<vmem>>, %arg2: memref<64x512xbf16, #tpu.memory_space<vmem>>, %arg3: memref<1x512xf32, #tpu.memory_space<vmem>>, %arg4: memref<512x32xbf16, #tpu.memory_space<vmem>>, %arg5: memref<1x32xf32, #tpu.memory_space<vmem>>, %arg6: memref<16x32xf32, #tpu.memory_space<vmem>>) attributes {dimension_semantics = [#tpu.dimension_semantics<parallel>], iteration_bounds = array<i64: 1>, scalar_prefetch = 0 : i64, scratch_operands = 0 : i64, tpu.core_type = #tpu.core_type<tc>, window_params = [{transform_indices = @transform_0, window_bounds = array<i64: 16, 64>}, {pipeline_mode = #tpu.pipeline_mode<synchronous>, transform_indices = @transform_1, window_bounds = array<i64: 64, 512>}, {pipeline_mode = #tpu.pipeline_mode<synchronous>, transform_indices = @transform_2, window_bounds = array<i64: 1, 512>}, {pipeline_mode = #tpu.pipeline_mode<synchronous>, transform_indices = @transform_3, window_bounds = array<i64: 512, 32>}, {pipeline_mode = #tpu.pipeline_mode<synchronous>, transform_indices = @transform_4, window_bounds = array<i64: 1, 32>}, {transform_indices = @transform_5, window_bounds = array<i64: 16, 32>}]} {
    %c0 = arith.constant 0 : index
    %c0_0 = arith.constant 0 : index
    %0 = vector.load %arg1[%c0, %c0_0] : memref<16x64xbf16, #tpu.memory_space<vmem>>, vector<16x64xbf16>
    %c0_1 = arith.constant 0 : index
    %c0_2 = arith.constant 0 : index
    %1 = vector.load %arg2[%c0_1, %c0_2] : memref<64x512xbf16, #tpu.memory_space<vmem>>, vector<64x512xbf16>
    %cst = arith.constant dense<0.000000e+00> : vector<16x512xf32>
    %2 = tpu.matmul %0, %1, %cst {dimension_numbers = #tpu.dot_dimension_numbers<[1], [0], [0], [1], [0, 0, 1, 1], [], []>} : vector<16x64xbf16>, vector<64x512xbf16>, vector<16x512xf32> -> vector<16x512xf32>
    %c0_3 = arith.constant 0 : index
    %c0_4 = arith.constant 0 : index
    %3 = vector.load %arg3[%c0_3, %c0_4] : memref<1x512xf32, #tpu.memory_space<vmem>>, vector<1x512xf32>
    %4 = vector.broadcast %3 : vector<1x512xf32> to vector<16x512xf32>
    %5 = arith.addf %2, %4 : vector<16x512xf32>
    %cst_5 = arith.constant 0.000000e+00 : f32
    %6 = vector.broadcast %cst_5 : f32 to vector<16x512xf32>
    %7 = arith.maximumf %5, %6 : vector<16x512xf32>
    %8 = arith.truncf %7 : vector<16x512xf32> to vector<16x512xbf16>
    %c0_6 = arith.constant 0 : index
    %c0_7 = arith.constant 0 : index
    %9 = vector.load %arg4[%c0_6, %c0_7] : memref<512x32xbf16, #tpu.memory_space<vmem>>, vector<512x32xbf16>
    %cst_8 = arith.constant dense<0.000000e+00> : vector<16x32xf32>
    %10 = tpu.matmul %8, %9, %cst_8 {dimension_numbers = #tpu.dot_dimension_numbers<[1], [0], [0], [1], [0, 0, 1, 1], [], []>} : vector<16x512xbf16>, vector<512x32xbf16>, vector<16x32xf32> -> vector<16x32xf32>
    %c0_9 = arith.constant 0 : index
    %c0_10 = arith.constant 0 : index
    %11 = vector.load %arg5[%c0_9, %c0_10] : memref<1x32xf32, #tpu.memory_space<vmem>>, vector<1x32xf32>
    %12 = vector.broadcast %11 : vector<1x32xf32> to vector<16x32xf32>
    %13 = arith.addf %10, %12 : vector<16x32xf32>
    %cst_11 = arith.constant 0.000000e+00 : f32
    %14 = vector.broadcast %cst_11 : f32 to vector<16x32xf32>
    %15 = arith.cmpf oge, %13, %14 : vector<16x32xf32>
    %cst_12 = arith.constant 0.000000e+00 : f32
    %16 = vector.broadcast %cst_12 : f32 to vector<16x32xf32>
    %17 = arith.subf %16, %13 : vector<16x32xf32>
    %18 = arith.select %15, %17, %13 : vector<16x32xi1>, vector<16x32xf32>
    %19 = math.exp %18 : vector<16x32xf32>
    %cst_13 = arith.constant 1.000000e+00 : f32
    %20 = vector.broadcast %cst_13 : f32 to vector<16x32xf32>
    %21 = arith.addf %20, %19 : vector<16x32xf32>
    %cst_14 = arith.constant 1.000000e+00 : f32
    %22 = vector.broadcast %cst_14 : f32 to vector<16x32xf32>
    %23 = arith.divf %22, %21 : vector<16x32xf32>
    %24 = arith.mulf %19, %23 : vector<16x32xf32>
    %25 = arith.select %15, %23, %24 : vector<16x32xi1>, vector<16x32xf32>
    %c0_15 = arith.constant 0 : index
    %c0_16 = arith.constant 0 : index
    %26 = vector.load %arg6[%c0_15, %c0_16] : memref<16x32xf32, #tpu.memory_space<vmem>>, vector<16x32xf32>
    tpu.vector_store %arg6[%c0_15, %c0_16], %25 {strides = array<i32>} : memref<16x32xf32, #tpu.memory_space<vmem>>, vector<16x32xf32>,
    return
  }
  func.func @transform_0(%arg0: i32) -> (i32, i32) {
    %c0_i32 = arith.constant 0 : i32
    %c0_i32_0 = arith.constant 0 : i32
    return %arg0, %c0_i32 : i32, i32
  }
  func.func @transform_1(%arg0: i32) -> (i32, i32) {
    %c0_i32 = arith.constant 0 : i32
    %c0_i32_0 = arith.constant 0 : i32
    %c0_i32_1 = arith.constant 0 : i32
    return %c0_i32, %c0_i32_0 : i32, i32
  }
  func.func @transform_2(%arg0: i32) -> (i32, i32) {
    %c0_i32 = arith.constant 0 : i32
    %c0_i32_0 = arith.constant 0 : i32
    %c0_i32_1 = arith.constant 0 : i32
    return %c0_i32, %c0_i32_0 : i32, i32
  }
  func.func @transform_3(%arg0: i32) -> (i32, i32) {
    %c0_i32 = arith.constant 0 : i32
    %c0_i32_0 = arith.constant 0 : i32
    %c0_i32_1 = arith.constant 0 : i32
    return %c0_i32, %c0_i32_0 : i32, i32
  }
  func.func @transform_4(%arg0: i32) -> (i32, i32) {
    %c0_i32 = arith.constant 0 : i32
    %c0_i32_0 = arith.constant 0 : i32
    %c0_i32_1 = arith.constant 0 : i32
    return %c0_i32, %c0_i32_0 : i32, i32
  }
  func.func @transform_5(%arg0: i32) -> (i32, i32) {
    %c0_i32 = arith.constant 0 : i32
    %c0_i32_0 = arith.constant 0 : i32
    return %arg0, %c0_i32 : i32, i32
  }
}

</mosaic_0001>

<bundles_post_ra>
// kernel: decoder_mlp512_forward.1
= control target key start
LH: loop header
LB: loop body
LE: loop exit
PB: predicated region body
PF: predicated region fallthrough
CT: control target
= control target key end

     0   :  { %vm135_vm0 = vcmask 523264   ;;  %s1120_s0 = inlined_call_operand.vmem [shape: bf16[16,64], index: 0, kind: input, shape index: {}]   ;;  %s1121_s1 = inlined_call_operand.vmem [shape: bf16[64,512], index: 1, kind: input, shape index: {}]   ;;  %s1122_s2 = inlined_call_operand.vmem [shape: f32[1,512], index: 2, kind: input, shape index: {}]   ;;  %s1123_s3 = inlined_call_operand.vmem [shape: bf16[512,32], index: 3, kind: input, shape index: {}]   ;;  %s1124_s4 = inlined_call_operand.vmem [shape: f32[1,32], index: 4, kind: input, shape index: {}]   ;;  %s1125_s5 = inlined_call_operand.hbm [shape: f32[16,32], index: 5, kind: output, shape index: {}]  }
   0x1   :  { %v644_v0 = vld [vmem:[%s1121_s1 + $0x60] sm:$0xf]  ;;  %v805_v1 = vld [vmem:[%s1121_s1 + $0x6c] sm:$0xf0]  ;;  %v803_v2 = vld [vmem:[%s1121_s1 + $0x64] sm:$0xf] }
   0x2   :  { %v645_v3 = vor.u32 %v805_v1, %v644_v0  ;;  %v646_v4 = vld [vmem:[%s1121_s1 + $0x70] sm:$0xf0]  ;;  %v652_v5 = vld [vmem:[%s1121_s1 + $0x68] sm:$0xf]  ;;  %v806_v6 = vld [vmem:[%s1121_s1 + $0x74] sm:$0xf0] }
   0x3   :  { %v649_v7 = vor.u32 %v803_v2, %v646_v4  ;;  %v653_v8 = vor.u32 %v806_v6, %v652_v5  ;;  %v804_v9 = vld [vmem:[%s1121_s1 + $0x6c] sm:$0xf]  ;;  %v654_v10 = vld [vmem:[%s1121_s1 + $0x78] sm:$0xf0]  ;;  %v628_v11 = vld [vmem:[%s1121_s1 + $0x40] sm:$0xf] }
   0x4   :  { %143 = vmatpush.bf16.msra.mxu0 %v645_v3  ;;  %v657_v12 = vor.u32 %v804_v9, %v654_v10  ;;  %v801_v13 = vld [vmem:[%s1121_s1 + $0x4c] sm:$0xf0]  ;;  %v799_v14 = vld [vmem:[%s1121_s1 + $0x44] sm:$0xf]  ;;  %v630_v15 = vld [vmem:[%s1121_s1 + $0x50] sm:$0xf0] }
   0x5   :  { %157 = vmatpush.bf16.msra.mxu1 %v649_v7  ;;  %171 = vmatpush.bf16.msra.mxu2 %v653_v8  ;;  %v629_v16 = vor.u32 %v801_v13, %v628_v11  ;;  %v633_v17 = vor.u32 %v799_v14, %v630_v15  ;;  %v636_v18 = vld [vmem:[%s1121_s1 + $0x48] sm:$0xf]  ;;  %v802_v19 = vld [vmem:[%s1121_s1 + $0x54] sm:$0xf0]  ;;  %v800_v20 = vld [vmem:[%s1121_s1 + $0x4c] sm:$0xf] }
   0x6   :  { %185 = vmatpush.bf16.msra.mxu3 %v657_v12  ;;  %v637_v21 = vor.u32 %v802_v19, %v636_v18  ;;  %v638_v22 = vld [vmem:[%s1121_s1 + $0x58] sm:$0xf0]  ;;  %v612_v23 = vld [vmem:[%s1121_s1 + $0x20] sm:$0xf]  ;;  %v797_v24 = vld [vmem:[%s1121_s1 + $0x2c] sm:$0xf0] }
   0x7   :  { %v641_v25 = vor.u32 %v800_v20, %v638_v22  ;;  %v795_v26 = vld [vmem:[%s1121_s1 + $0x24] sm:$0xf]  ;;  %v614_v27 = vld [vmem:[%s1121_s1 + $0x30] sm:$0xf0]  ;;  %v620_v28 = vld [vmem:[%s1121_s1 + $0x28] sm:$0xf]  ;;  %v613_v29 = vor.u32 %v797_v24, %v612_v23 }
   0x8   :  { %144 = vmatpush.bf16.msra.mxu0 %v629_v16  ;;  %v798_v30 = vld [vmem:[%s1121_s1 + $0x34] sm:$0xf0]  ;;  %v796_v31 = vld [vmem:[%s1121_s1 + $0x2c] sm:$0xf]  ;;  %v622_v32 = vld [vmem:[%s1121_s1 + $0x38] sm:$0xf0]  ;;  %v617_v33 = vor.u32 %v795_v26, %v614_v27 }
   0x9   :  { %158 = vmatpush.bf16.msra.mxu1 %v633_v17  ;;  %172 = vmatpush.bf16.msra.mxu2 %v637_v21  ;;  %v621_v34 = vor.u32 %v798_v30, %v620_v28  ;;  %v596_v35 = vld [vmem:[%s1121_s1] sm:$0xf]  ;;  %v793_v36 = vld [vmem:[%s1121_s1 + $0xc] sm:$0xf0]  ;;  %v791_v37 = vld [vmem:[%s1121_s1 + $0x4] sm:$0xf]  ;;  %v625_v38 = vor.u32 %v796_v31, %v622_v32 }
   0xa   :  { %186 = vmatpush.bf16.msra.mxu3 %v641_v25  ;;  %v598_v39 = vld [vmem:[%s1121_s1 + $0x10] sm:$0xf0]  ;;  %v604_v40 = vld [vmem:[%s1121_s1 + $0x8] sm:$0xf]  ;;  %v794_v41 = vld [vmem:[%s1121_s1 + $0x14] sm:$0xf0]  ;;  %v597_v44 = vor.u32 %v793_v36, %v596_v35 }
   0xb   :  { %v792_v42 = vld [vmem:[%s1121_s1 + $0xc] sm:$0xf]  ;;  %v606_v43 = vld [vmem:[%s1121_s1 + $0x18] sm:$0xf0]  ;;  %v601_v45 = vor.u32 %v791_v37, %v598_v39  ;;  %v605_v46 = vor.u32 %v794_v41, %v604_v40  ;;  %v790_v49 = vld [vmem:[%s1120_s0] sm:$0xff] }
   0xc   :  { %145 = vmatpush.bf16.msra.mxu0 %v613_v29  ;;  %v609_v47 = vor.u32 %v792_v42, %v606_v43  ;;  %v814_v48 = vld [vmem:[%s1123_s3 + $0x38] sm:$0xff] }
   0xd   :  { %159 = vmatpush.bf16.msra.mxu1 %v617_v33  ;;  %173 = vmatpush.bf16.msra.mxu2 %v621_v34  ;;  %v822_v50 = vld [vmem:[%s1123_s3 + $0x78] sm:$0xff] }
   0xe   :  { %187 = vmatpush.bf16.msra.mxu3 %v625_v38  ;;  %v830_v51 = vld [vmem:[%s1123_s3 + $0xb8] sm:$0xff] }
  0x10   :  { %146 = vmatpush.bf16.msra.mxu0 %v597_v44 }
  0x11   :  { %160 = vmatpush.bf16.msra.mxu1 %v601_v45  ;;  %174 = vmatpush.bf16.msra.mxu2 %v605_v46 }
  0x12   :  { %10 = vsyncpa [#allocation3], 0  ;;  %188 = vmatpush.bf16.msra.mxu3 %v609_v47  ;;  %v813_v52 = vld [vmem:[%s1123_s3 + $0x30] sm:$0xff]  ;;  %v838_v53 = vld [vmem:[%s1123_s3 + $0xf8] sm:$0xff]  ;;  %vm569_vm7 = vcmask 261120   ;;  %s578_s22 = sshll.u32 %s1125_s5, 4  ;;  %s579_s22 = int_to_ptr.hbm [resolvable:$true] %s578_s22 }
  0x13   :  { %658 = vmatmul.msk.bf16.vlgmr.msra.gmra.mxu0 %vm135_vm0, %v790_v49  ;;  %v821_v54 = vld [vmem:[%s1123_s3 + $0x70] sm:$0xff]  ;;  %v812_v56 = vld [vmem:[%s1123_s3 + $0x28] sm:$0xff]  ;;  %v811_v60 = vld [vmem:[%s1123_s3 + $0x20] sm:$0xff]  ;;  %s878_s23 = smov 128   ;;  %s879_s24 = smov 8  }
  0x14   :  { %467 = vmatpush.bf16.msrb.mxu0 %v814_v48  ;;  %659 = vmatmul.msk.bf16.vlgmr.msra.gmra.mxu1 %vm135_vm0, %v790_v49  ;;  %v829_v55 = vld [vmem:[%s1123_s3 + $0xb0] sm:$0xff]  ;;  %v820_v58 = vld [vmem:[%s1123_s3 + $0x68] sm:$0xff]  ;;  %v819_v62 = vld [vmem:[%s1123_s3 + $0x60] sm:$0xff] }
  0x15   :  { %481 = vmatpush.bf16.msrb.mxu1 %v822_v50  ;;  %660 = vmatmul.msk.bf16.vlgmr.msra.gmra.mxu2 %vm135_vm0, %v790_v49  ;;  %v837_v57 = vld [vmem:[%s1123_s3 + $0xf0] sm:$0xff]  ;;  %v828_v59 = vld [vmem:[%s1123_s3 + $0xa8] sm:$0xff]  ;;  %v810_v63 = vld [vmem:[%s1123_s3 + $0x18] sm:$0xff] }
  0x16   :  { %661 = vmatmul.msk.bf16.vlgmr.msra.gmra.mxu3 %vm135_vm0, %v790_v49  ;;  %495 = vmatpush.bf16.msrb.mxu2 %v830_v51  ;;  %v836_v61 = vld [vmem:[%s1123_s3 + $0xe8] sm:$0xff]  ;;  %v818_v0 = vld [vmem:[%s1123_s3 + $0x58] sm:$0xff]  ;;  %v827_v1 = vld [vmem:[%s1123_s3 + $0xa0] sm:$0xff] }
  0x17   :  { %509 = vmatpush.bf16.msrb.mxu3 %v838_v53  ;;  %v835_v2 = vld [vmem:[%s1123_s3 + $0xe0] sm:$0xff]  ;;  %v809_v3 = vld [vmem:[%s1123_s3 + $0x10] sm:$0xff]  ;;  %v826_v5 = vld [vmem:[%s1123_s3 + $0x98] sm:$0xff] }
  0x18   :  { %468 = vmatpush.bf16.msrb.mxu0 %v813_v52  ;;  %v817_v4 = vld [vmem:[%s1123_s3 + $0x50] sm:$0xff]  ;;  %v834_v6 = vld [vmem:[%s1123_s3 + $0xd8] sm:$0xff]  ;;  %v808_v7 = vld [vmem:[%s1123_s3 + $0x8] sm:$0xff] }
  0x19   :  { %482 = vmatpush.bf16.msrb.mxu1 %v821_v54  ;;  %v816_v8 = vld [vmem:[%s1123_s3 + $0x48] sm:$0xff]  ;;  %v825_v9 = vld [vmem:[%s1123_s3 + $0x90] sm:$0xff]  ;;  %v807_v11 = vld [vmem:[%s1123_s3] sm:$0xff] }
  0x1a   :  { %496 = vmatpush.bf16.msrb.mxu2 %v829_v55  ;;  %v833_v10 = vld [vmem:[%s1123_s3 + $0xd0] sm:$0xff]  ;;  %v815_v12 = vld [vmem:[%s1123_s3 + $0x40] sm:$0xff]  ;;  %v824_v13 = vld [vmem:[%s1123_s3 + $0x88] sm:$0xff] }
  0x1b   :  { %510 = vmatpush.bf16.msrb.mxu3 %v837_v57  ;;  %v832_v14 = vld [vmem:[%s1123_s3 + $0xc8] sm:$0xff]  ;;  %v823_v15 = vld [vmem:[%s1123_s3 + $0x80] sm:$0xff] }
  0x1c   :  { %469 = vmatpush.bf16.msrb.mxu0 %v812_v56  ;;  %v831_v16 = vld [vmem:[%s1123_s3 + $0xc0] sm:$0xff] }
  0x1d   :  { %483 = vmatpush.bf16.msrb.mxu1 %v820_v58  ;;  %v40_v17 = vld [vmem:[%s1122_s2] sm:$0xf] }
  0x1e   :  { %497 = vmatpush.bf16.msrb.mxu2 %v828_v59  ;;  %v42_v19 = vperm.slane %v40_v17, 0  ;;  %v43_v21 = vperm.slane %v40_v17, 1  ;;  %v44_v31 = vperm.slane %v40_v17, 2  ;;  %v45_v33 = vperm.slane %v40_v17, 3  ;;  %v842_v51 = vld [vmem:[%s1124_s4] ss:$0 sm:$0xff] }
  0x1f   :  { %511 = vmatpush.bf16.msrb.mxu3 %v836_v61  ;;  %s877_s4 = smov [#allocation2]  }
  0x20   :  { %470 = vmatpush.bf16.msrb.mxu0 %v811_v60  ;;  %s576_s19 = sshll.u32 %s877_s4, 4  ;;  %s577_s19 = int_to_ptr.vmem [resolvable:$true] %s576_s19 }
  0x21   :  { %484 = vmatpush.bf16.msrb.mxu1 %v819_v62 }
  0x22   :  { %498 = vmatpush.bf16.msrb.mxu2 %v827_v1 }
  0x23   :  { %512 = vmatpush.bf16.msrb.mxu3 %v835_v2 }
  0x24   :  { %471 = vmatpush.bf16.msrb.mxu0 %v810_v63 }
  0x25   :  { %485 = vmatpush.bf16.msrb.mxu1 %v818_v0 }
  0x26   :  { %499 = vmatpush.bf16.msrb.mxu2 %v826_v5 }
  0x27   :  { %513 = vmatpush.bf16.msrb.mxu3 %v834_v6 }
  0x28   :  { %472 = vmatpush.bf16.msrb.mxu0 %v809_v3 }
  0x29   :  { %486 = vmatpush.bf16.msrb.mxu1 %v817_v4 }
  0x2a   :  { %500 = vmatpush.bf16.msrb.mxu2 %v825_v9 }
  0x2b   :  { %514 = vmatpush.bf16.msrb.mxu3 %v833_v10 }
  0x2c   :  { %473 = vmatpush.bf16.msrb.mxu0 %v808_v7 }
  0x2d   :  { %487 = vmatpush.bf16.msrb.mxu1 %v816_v8 }
  0x2e   :  { %501 = vmatpush.bf16.msrb.mxu2 %v824_v13 }
  0x2f   :  { %515 = vmatpush.bf16.msrb.mxu3 %v832_v14 }
  0x30   :  { %474 = vmatpush.bf16.msrb.mxu0 %v807_v11 }
  0x31   :  { %488 = vmatpush.bf16.msrb.mxu1 %v815_v12 }
  0x32   :  { %502 = vmatpush.bf16.msrb.mxu2 %v823_v15 }
  0x33   :  { %516 = vmatpush.bf16.msrb.mxu3 %v831_v16 }
  0x90   :  { %v148_v18 = vpop.f32.mrf.mxu0 }
  0x91   :  { %v162_v20 = vpop.f32.mrf.mxu1  ;;  %v149_v22 = vadd.f32 %v148_v18, %v42_v19 }
  0x92   :  { %v163_v23 = vadd.f32 %v162_v20, %v43_v21 }
  0x93   :  { %v195_v27 = vmax.f32 %v149_v22, 0.0 }
  0x94   :  { %v196_v30 = vmax.f32 %v163_v23, 0.0 }
  0x98   :  { %v176_v24 = vpop.f32.mrf.mxu2  ;;  %v150_v26 = vpop.f32.mrf.mxu0 }
  0x99   :  { %v190_v25 = vpop.f32.mrf.mxu3  ;;  %v151_v28 = vadd.f32 %v150_v26, %v42_v19  ;;  %v164_v29 = vpop.f32.mrf.mxu1  ;;  %v177_v37 = vadd.f32 %v176_v24, %v44_v31 }
  0x9a   :  { %v165_v32 = vadd.f32 %v164_v29, %v43_v21  ;;  %v191_v39 = vadd.f32 %v190_v25, %v45_v33 }
  0x9b   :  { %v199_v34 = vmax.f32 %v151_v28, 0.0  ;;  %v197_v44 = vmax.f32 %v177_v37, 0.0 }
  0x9c   :  { %v200_v35 = vmax.f32 %v165_v32, 0.0  ;;  %v198_v46 = vmax.f32 %v191_v39, 0.0 }
  0x9d   :  { %v203_v36 = vpack.c.bf16 %v199_v34, %v195_v27 }
  0x9e   :  { %v204_v38 = vpack.c.bf16 %v200_v35, %v196_v30 }
  0x9f   :  { %475 = vmatmul.bf16.vlgmr.msrb.gmra.mxu0 %v203_v36 }
  0xa0   :  { %v178_v40 = vpop.f32.mrf.mxu2  ;;  %489 = vmatmul.bf16.vlgmr.msrb.gmra.mxu1 %v204_v38 }
  0xa1   :  { %v179_v41 = vadd.f32 %v178_v40, %v44_v31  ;;  %v192_v42 = vpop.f32.mrf.mxu3 }
  0xa2   :  { %v193_v43 = vadd.f32 %v192_v42, %v45_v33 }
  0xa3   :  { %v201_v45 = vmax.f32 %v179_v41, 0.0 }
  0xa4   :  { %v202_v47 = vmax.f32 %v193_v43, 0.0 }
  0xa5   :  { %v205_v48 = vpack.c.bf16 %v201_v45, %v197_v44 }
  0xa6   :  { %v206_v49 = vpack.c.bf16 %v202_v47, %v198_v46 }
  0xa7   :  { %503 = vmatmul.bf16.vlgmr.msrb.gmra.mxu2 %v205_v48 }
  0xa8   :  { %517 = vmatmul.bf16.vlgmr.msrb.gmra.mxu3 %v206_v49 }
 0x11c   :  { %v476_v50 = vpop.f32.mrf.mxu0 }
 0x11d   :  { %v477_v52 = vadd.f32 %v842_v51, %v476_v50  ;;  %v490_v53 = vpop.f32.mrf.mxu1 }
 0x11f   :  { %v491_v54 = vadd.f32 %v490_v53, %v477_v52 }
 0x124   :  { %v478_v55 = vpop.f32.mrf.mxu0 }
 0x125   :  { %v479_v59 = vadd.f32 %v842_v51, %v478_v55  ;;  %v492_v62 = vpop.f32.mrf.mxu1 }
 0x127   :  { %v493_v63 = vadd.f32 %v492_v62, %v479_v59 }
 0x12a   :  { %v504_v56 = vpop.f32.mrf.mxu2 }
 0x12b   :  { %v505_v57 = vadd.f32 %v504_v56, %v491_v54  ;;  %v518_v58 = vpop.f32.mrf.mxu3 }
 0x12d   :  { %v519_v60 = vadd.f32 %v518_v58, %v505_v57 }
 0x12f   :  { %vm523_vm1 = vcmp.ge.f32.partialorder %v519_v60, 0.0  ;;  %v525_v61 = vsub.f32 0.0, %v519_v60 }
 0x131   :  { %v527_v0 = vsel %vm523_vm1, %v525_v61, %v519_v60 }
 0x132   :  { %v529_v1 = vmul.f32 1.442695, %v527_v0  ;;  %v506_v2 = vpop.f32.mrf.mxu2 }
 0x133   :  { %v507_v3 = vadd.f32 %v506_v2, %v493_v63  ;;  %v520_v4 = vpop.f32.mrf.mxu3 }
 0x134   :  { %843 = vpow2.f32 %v529_v1 }
 0x135   :  { %v521_v5 = vadd.f32 %v520_v4, %v507_v3 }
 0x137   :  { %vm524_vm2 = vcmp.ge.f32.partialorder %v521_v5, 0.0  ;;  %v526_v6 = vsub.f32 0.0, %v521_v5 }
 0x139   :  { %v528_v7 = vsel %vm524_vm2, %v526_v6, %v521_v5 }
 0x13a   :  { %v844_v8 = vpop.eup %843  ;;  %v531_v9 = vmul.f32 1.442695, %v528_v7 }
 0x13b   :  { %v533_v10 = vadd.f32 1.0, %v844_v8 }
 0x13c   :  { %845 = vpow2.f32 %v531_v9 }
 0x13d   :  { %847 = vrcp.f32 %v533_v10  ;;  %v546_v16 = vand.u32 2147483648, %v533_v10  ;;  %v544_v18 = vand.u32 2147483647, %v533_v10  ;;  %vm540_vm4 = vweird.f32 %v533_v10 }
 0x13f   :  { %v547_v21 = vor.u32 1.1754944e-38, %v546_v16  ;;  %vm545_vm6 = vcmp.eq.f32.partialorder %v544_v18, 8.507059e+37 }
 0x142   :  { %v846_v11 = vpop.eup %845 }
 0x143   :  { %v848_v12 = vpop.eup %847  ;;  %v534_v13 = vadd.f32 1.0, %v846_v11 }
 0x144   :  { %v536_v14 = vmul.f32 %v848_v12, %v533_v10  ;;  %vm541_vm3 = vweird.f32 %v848_v12 }
 0x145   :  { %849 = vrcp.f32 %v534_v13  ;;  %vm542_vm5 = vmor %vm540_vm4, %vm541_vm3  ;;  %v561_v27 = vand.u32 2147483648, %v534_v13  ;;  %v559_v30 = vand.u32 2147483647, %v534_v13  ;;  %vm555_vm9 = vweird.f32 %v534_v13 }
 0x146   :  { %v537_v15 = vsub.f32 1.0, %v536_v14 }
 0x147   :  { %v562_v32 = vor.u32 1.1754944e-38, %v561_v27  ;;  %vm560_vm11 = vcmp.eq.f32.partialorder %v559_v30, 8.507059e+37 }
 0x148   :  { %v538_v17 = vmul.f32 %v848_v12, %v537_v15 }
 0x14a   :  { %v539_v19 = vadd.f32 %v848_v12, %v538_v17 }
 0x14b   :  { %v850_v20 = vpop.eup %849 }
 0x14c   :  { %v543_v22 = vsel %vm542_vm5, %v848_v12, %v539_v19  ;;  %v551_v23 = vmul.f32 %v850_v20, %v534_v13  ;;  %vm556_vm8 = vweird.f32 %v850_v20 }
 0x14d   :  { %v548_v24 = vsel %vm545_vm6, %v547_v21, %v543_v22  ;;  %vm557_vm10 = vmor %vm555_vm9, %vm556_vm8 }
 0x14e   :  { %v565_v25 = vmul.f32 %v844_v8, %v548_v24  ;;  %v552_v26 = vsub.f32 1.0, %v551_v23 }
 0x150   :  { %v567_v28 = vsel %vm523_vm1, %v548_v24, %v565_v25  ;;  %v553_v29 = vmul.f32 %v850_v20, %v552_v26 }
 0x151   :  { %570 = vst.msk [vmem:[#allocation2] sm:$0xff] %vm569_vm7, %v567_v28 }
 0x152   :  { %v554_v31 = vadd.f32 %v850_v20, %v553_v29 }
 0x154   :  { %v558_v33 = vsel %vm557_vm10, %v850_v20, %v554_v31 }
 0x155   :  { %v563_v34 = vsel %vm560_vm11, %v562_v32, %v558_v33 }
 0x156   :  { %v566_v35 = vmul.f32 %v846_v11, %v563_v34 }
 0x158   :  { %v568_v36 = vsel %vm524_vm2, %v563_v34, %v566_v35 }
 0x159   :  { %571 = vst.msk [vmem:[#allocation2 + $0x8] sm:$0xff] %vm569_vm7, %v568_v36 }
 0x15a   :  { %584 = dma.vmem_to_hbm [thread:$0]  %s577_s19, 256, %s579_s22, [#allocation3], %s878_s23, %s878_s23, %s879_s24  }
 0x15b   :  { %875 = dma.done.wait [#allocation3], 256  }
 0x15c   :  { %876 = vsyncadd [#allocation3], 4294967040 }
 0x15d   :  { %589 = vsyncpa [#allocation3], 1 }

</bundles_post_ra>
